<compile_context>
chip_gen: v6e
topology: v6e:2x2x1
jax: 0.10.0
libtpu: 0.0.40
codegen_flags: <defaults>
</compile_context>

<pallas_src>
import jax
import jax.numpy as jnp
from jax.experimental import pallas as pl
from jax.experimental.pallas import tpu as pltpu

_HIDDEN = 256           # _hidden_size in the PyTorch module
_LEAKY_SLOPE = 0.01     # torch.nn.LeakyReLU default negative_slope


def _winder_actor_kernel(x_ref, w1_ref, b1_ref, w2_ref, b2_ref, mask_ref,
                         policy_ref, q_ref, v_ref):
    H = _HIDDEN
    x = x_ref[...]            # (N, D) f32
    mask = mask_ref[...]      # (N, 1) f32  (1.0 where editable, else 0.0)

    # ---- fused actor|critic first layer on the MXU: (N, D) @ (D, 2H) ----
    h = jnp.dot(x, w1_ref[...], preferred_element_type=jnp.float32) + b1_ref[...]
    h = jnp.where(h > 0, h, _LEAKY_SLOPE * h)             # LeakyReLU (VPU)

    # ---- second Linear(H, 1) layers as VPU multiply + lane reduce ----
    # w2_ref is the lane-major (1, 2H) row [w2a | w2c]; static 128-lane-aligned
    # slices of hw are free.
    hw = h * w2_ref[...]                                   # (N, 2H)
    la = jnp.sum(hw[:, :H], axis=-1, keepdims=True) + b2_ref[0]   # (N, 1) actor logits
    lc = jnp.sum(hw[:, H:], axis=-1, keepdims=True) + b2_ref[1]   # (N, 1) critic logits

    # ---- stable softmax over the layer axis (axis 0), mask, normalize ----
    ea = jnp.exp(la - jnp.max(la, axis=0, keepdims=True))
    ec = jnp.exp(lc - jnp.max(lc, axis=0, keepdims=True))
    sa = jnp.sum(ea, axis=0, keepdims=True)                # (1, 1)
    sc = jnp.sum(ec, axis=0, keepdims=True)                # (1, 1)

    mea = ea * mask
    # softmax -> mask -> renorm(+1e-9) folded into one divide:
    #   (ea*mask/sa) / (sum(ea*mask)/sa + 1e-9) == (ea*mask) / (sum(ea*mask) + 1e-9*sa)
    policy = mea / (jnp.sum(mea, axis=0, keepdims=True) + 1e-9 * sa)
    Q = (ec * mask) / sc

    policy_ref[...] = policy
    q_ref[...] = Q
    v_ref[...] = jnp.sum(policy * Q, axis=0, keepdims=True)   # (1, 1)


def init_winder_actor_params(key, input_size, hidden=_HIDDEN):
    """Init mimicking torch.nn.Linear defaults (uniform +-1/sqrt(fan_in)).

    Parameters are stored pre-fused for the kernel:
      w1 : (D, 2H)   = [w1a | w1c]          (in, out) layout
      b1 : (1, 2H)   = [b1a | b1c]
      w2 : (1, 2H)   = [w2a_row | w2c_row]  lane-major rows of the (H,1) weights
      b2 : (2,)      = [b2a, b2c]           scalars (SMEM)
    """
    ks = jax.random.split(key, 8)

    def lin(kw, kb, fan_in, fan_out):
        bound = 1.0 / jnp.sqrt(jnp.float32(fan_in))
        w = jax.random.uniform(kw, (fan_in, fan_out), jnp.float32, -bound, bound)
        b = jax.random.uniform(kb, (1, fan_out), jnp.float32, -bound, bound)
        return w, b

    w1a, b1a = lin(ks[0], ks[1], input_size, hidden)
    w2a, b2a = lin(ks[2], ks[3], hidden, 1)
    w1c, b1c = lin(ks[4], ks[5], input_size, hidden)
    w2c, b2c = lin(ks[6], ks[7], hidden, 1)

    return dict(
        w1=jnp.concatenate([w1a, w1c], axis=1),                      # (D, 2H)
        b1=jnp.concatenate([b1a, b1c], axis=1),                      # (1, 2H)
        w2=jnp.concatenate([w2a.T, w2c.T], axis=1),                  # (1, 2H)
        b2=jnp.concatenate([b2a.reshape(1), b2c.reshape(1)]),        # (2,)
    )


def winder_actor_forward_batched(features_b, editable_b, params):
    """Batched forward.

    features_b: (B, N, D) f32, editable_b: (B, N) bool/int.
    Returns (policy (B, N), Q (B, N), V (B,)).
    Weights stay VMEM-resident across the batch grid (constant index maps);
    batch axis is "parallel" so v7x can split it across its two TensorCores.
    """
    B, N, D = features_b.shape
    H2 = 2 * _HIDDEN
    xb = jnp.asarray(features_b, jnp.float32)
    maskb = jnp.asarray(editable_b).reshape(B, N, 1).astype(jnp.float32)

    policy, Q, V = pl.pallas_call(
        _winder_actor_kernel,
        out_shape=(
            jax.ShapeDtypeStruct((B, N, 1), jnp.float32),   # policy
            jax.ShapeDtypeStruct((B, N, 1), jnp.float32),   # Q
            jax.ShapeDtypeStruct((B, 1, 1), jnp.float32),   # V
        ),
        grid=(B,),
        in_specs=[
            pl.BlockSpec((None, N, D), lambda b: (b, 0, 0)),                 # x
            pl.BlockSpec((D, H2), lambda b: (0, 0)),                         # fused W1
            pl.BlockSpec((1, H2), lambda b: (0, 0)),                         # fused b1
            pl.BlockSpec((1, H2), lambda b: (0, 0)),                         # fused W2 rows
            pl.BlockSpec(memory_space=pltpu.MemorySpace.SMEM),               # b2 scalars
            pl.BlockSpec((None, N, 1), lambda b: (b, 0, 0)),                 # mask
        ],
        out_specs=(
            pl.BlockSpec((None, N, 1), lambda b: (b, 0, 0)),
            pl.BlockSpec((None, N, 1), lambda b: (b, 0, 0)),
            pl.BlockSpec((None, 1, 1), lambda b: (b, 0, 0)),
        ),
        compiler_params=pltpu.CompilerParams(
            dimension_semantics=("parallel",)),
    )(xb, params["w1"], params["b1"], params["w2"], params["b2"], maskb)

    return policy.reshape(B, N), Q.reshape(B, N), V.reshape(B)


def winder_actor_forward(features, editable, params):
    """Single forward matching the PyTorch module.

    features: (1, N, D) f32; editable: (N,) bool/int.
    Returns (policy (N,), Q (N,), V scalar).
    """
    N, D = features.shape[-2], features.shape[-1]
    x = jnp.asarray(features, jnp.float32).reshape(1, N, D)
    mask = jnp.asarray(editable).reshape(1, N)
    p, q, v = winder_actor_forward_batched(x, mask, params)
    return p[0], q[0], v[0]


def _reference_forward(features, editable, params):
    """Pure-JAX reference mirroring the PyTorch code (two-step renorm)."""
    H = _HIDDEN
    x = jnp.asarray(features, jnp.float32).reshape(features.shape[-2], features.shape[-1])
    mask = jnp.asarray(editable).astype(jnp.float32)

    def mlp(w1, b1, w2_row, b2):
        h = x @ w1 + b1
        h = jnp.where(h > 0, h, _LEAKY_SLOPE * h)
        return (h @ w2_row.reshape(-1, 1) + b2).reshape(-1)

    la = mlp(params["w1"][:, :H], params["b1"][:, :H], params["w2"][0, :H], params["b2"][0])
    lc = mlp(params["w1"][:, H:], params["b1"][:, H:], params["w2"][0, H:], params["b2"][1])
    policy = jax.nn.softmax(la, axis=0) * mask
    policy = policy / (policy.sum() + 1e-9)
    Q = jax.nn.softmax(lc, axis=0) * mask
    V = (Q * policy).sum()
    return policy, Q, V


# TODO(synk): get_action's Categorical(policy).sample() is host-side RNG sampling,
# not part of the forward pass, so it is intentionally not implemented in-kernel.


if __name__ == "__main__":
    key = jax.random.PRNGKey(0)
    k_feat, k_params, k_bfeat, k_bmask = jax.random.split(key, 4)

    N = 8    # number of candidate layers (the softmax / mask axis)
    D = 32   # encoder output feature size (input_size)

    # ---- single forward (matches the PyTorch module interface) ----
    features = jax.random.normal(k_feat, (1, N, D), jnp.float32)
    editable = jnp.array([1, 0, 1, 1, 0, 1, 1, 1], jnp.int32)
    params = init_winder_actor_params(k_params, D)

    policy, Q, V = winder_actor_forward(features, editable, params)
    jax.block_until_ready((policy, Q, V))

    p_ref, q_ref, v_ref = _reference_forward(features, editable, params)
    assert jnp.allclose(policy, p_ref, atol=1e-5), "policy mismatch"
    assert jnp.allclose(Q, q_ref, atol=1e-5), "Q mismatch"
    assert jnp.allclose(V, v_ref, atol=1e-5), "V mismatch"
    assert abs(float(policy.sum()) - 1.0) < 1e-4

    # ---- batched forward: B problems, one pallas_call, parallel grid axis ----
    B = 4
    feats_b = jax.random.normal(k_bfeat, (B, N, D), jnp.float32)
    edit_b = (jax.random.uniform(k_bmask, (B, N)) > 0.3).astype(jnp.int32)
    edit_b = edit_b.at[:, 0].set(1)   # at least one editable layer per row

    p_b, q_b, v_b = winder_actor_forward_batched(feats_b, edit_b, params)
    jax.block_until_ready((p_b, q_b, v_b))
    for b in range(B):
        pr, qr, vr = _reference_forward(feats_b[b:b + 1], edit_b[b], params)
        assert jnp.allclose(p_b[b], pr, atol=1e-5), f"batched policy mismatch row {b}"
        assert jnp.allclose(q_b[b], qr, atol=1e-5), f"batched Q mismatch row {b}"
        assert jnp.allclose(v_b[b], vr, atol=1e-5), f"batched V mismatch row {b}"

    print("KERNEL_OK")
</pallas_src>

<mosaic_0001>
module attributes {stable_mosaic.version = 11 : i64} {
  func.func @_winder_actor_kernel(%arg0: i32, %arg1: memref<1x8x32xf32, #tpu.memory_space<vmem>>, %arg2: memref<32x512xf32, #tpu.memory_space<vmem>>, %arg3: memref<1x512xf32, #tpu.memory_space<vmem>>, %arg4: memref<1x512xf32, #tpu.memory_space<vmem>>, %arg5: memref<2xf32, #tpu.memory_space<smem>>, %arg6: memref<1x8x1xf32, #tpu.memory_space<vmem>>, %arg7: memref<1x8x1xf32, #tpu.memory_space<vmem>>, %arg8: memref<1x8x1xf32, #tpu.memory_space<vmem>>, %arg9: memref<1x1x1xf32, #tpu.memory_space<vmem>>) attributes {dimension_semantics = [#tpu.dimension_semantics<parallel>], iteration_bounds = array<i64: 1>, scalar_prefetch = 0 : i64, scratch_operands = 0 : i64, tpu.core_type = #tpu.core_type<tc>, window_params = [{transform_indices = @transform_0, window_bounds = array<i64: 1, 8, 32>}, {pipeline_mode = #tpu.pipeline_mode<synchronous>, transform_indices = @transform_1, window_bounds = array<i64: 32, 512>}, {pipeline_mode = #tpu.pipeline_mode<synchronous>, transform_indices = @transform_2, window_bounds = array<i64: 1, 512>}, {pipeline_mode = #tpu.pipeline_mode<synchronous>, transform_indices = @transform_3, window_bounds = array<i64: 1, 512>}, {transform_indices = @transform_4, window_bounds = array<i64: 2>}, {transform_indices = @transform_5, window_bounds = array<i64: 1, 8, 1>}, {transform_indices = @transform_6, window_bounds = array<i64: 1, 8, 1>}, {transform_indices = @transform_7, window_bounds = array<i64: 1, 8, 1>}, {transform_indices = @transform_8, window_bounds = array<i64: 1, 1, 1>}]} {
    %c0 = arith.constant 0 : index
    %c0_0 = arith.constant 0 : index
    %c0_1 = arith.constant 0 : index
    %0 = vector.load %arg1[%c0, %c0_0, %c0_1] : memref<1x8x32xf32, #tpu.memory_space<vmem>>, vector<1x8x32xf32>
    %1 = vector.shape_cast %0 : vector<1x8x32xf32> to vector<8x32xf32>
    %c0_2 = arith.constant 0 : index
    %c0_3 = arith.constant 0 : index
    %c0_4 = arith.constant 0 : index
    %2 = vector.load %arg6[%c0_2, %c0_3, %c0_4] : memref<1x8x1xf32, #tpu.memory_space<vmem>>, vector<1x8x1xf32>
    %3 = vector.shape_cast %2 : vector<1x8x1xf32> to vector<8x1xf32>
    %c0_5 = arith.constant 0 : index
    %c0_6 = arith.constant 0 : index
    %4 = vector.load %arg2[%c0_5, %c0_6] : memref<32x512xf32, #tpu.memory_space<vmem>>, vector<32x512xf32>
    %cst = arith.constant dense<0.000000e+00> : vector<8x512xf32>
    %5 = tpu.matmul %1, %4, %cst {dimension_numbers = #tpu.dot_dimension_numbers<[1], [0], [0], [1], [0, 0, 1, 1], [], []>} : vector<8x32xf32>, vector<32x512xf32>, vector<8x512xf32> -> vector<8x512xf32>
    %c0_7 = arith.constant 0 : index
    %c0_8 = arith.constant 0 : index
    %6 = vector.load %arg3[%c0_7, %c0_8] : memref<1x512xf32, #tpu.memory_space<vmem>>, vector<1x512xf32>
    %7 = vector.broadcast %6 : vector<1x512xf32> to vector<8x512xf32>
    %8 = arith.addf %5, %7 : vector<8x512xf32>
    %cst_9 = arith.constant 0.000000e+00 : f32
    %9 = vector.broadcast %cst_9 : f32 to vector<8x512xf32>
    %10 = arith.cmpf ogt, %8, %9 : vector<8x512xf32>
    %cst_10 = arith.constant 0.00999999977 : f32
    %11 = vector.broadcast %cst_10 : f32 to vector<8x512xf32>
    %12 = arith.mulf %11, %8 : vector<8x512xf32>
    %13 = arith.select %10, %8, %12 : vector<8x512xi1>, vector<8x512xf32>
    %c0_11 = arith.constant 0 : index
    %c0_12 = arith.constant 0 : index
    %14 = vector.load %arg4[%c0_11, %c0_12] : memref<1x512xf32, #tpu.memory_space<vmem>>, vector<1x512xf32>
    %15 = vector.broadcast %14 : vector<1x512xf32> to vector<8x512xf32>
    %16 = arith.mulf %13, %15 : vector<8x512xf32>
    %17 = vector.extract_strided_slice %16 {offsets = [0, 0], sizes = [8, 256], strides = [1, 1]} : vector<8x512xf32> to vector<8x256xf32>
    %cst_13 = arith.constant dense<0.000000e+00> : vector<8xf32>
    %18 = vector.multi_reduction <add>, %17, %cst_13 [1] : vector<8x256xf32> to vector<8xf32>
    %19 = vector.shape_cast %18 : vector<8xf32> to vector<8x1xf32>
    %c0_14 = arith.constant 0 : index
    %20 = memref.load %arg5[%c0_14] : memref<2xf32, #tpu.memory_space<smem>>
    %21 = vector.broadcast %20 : f32 to vector<8x1xf32>
    %22 = arith.addf %19, %21 : vector<8x1xf32>
    %23 = vector.extract_strided_slice %16 {offsets = [0, 256], sizes = [8, 256], strides = [1, 1]} : vector<8x512xf32> to vector<8x256xf32>
    %cst_15 = arith.constant dense<0.000000e+00> : vector<8xf32>
    %24 = vector.multi_reduction <add>, %23, %cst_15 [1] : vector<8x256xf32> to vector<8xf32>
    %25 = vector.shape_cast %24 : vector<8xf32> to vector<8x1xf32>
    %c1 = arith.constant 1 : index
    %26 = memref.load %arg5[%c1] : memref<2xf32, #tpu.memory_space<smem>>
    %27 = vector.broadcast %26 : f32 to vector<8x1xf32>
    %28 = arith.addf %25, %27 : vector<8x1xf32>
    %cst_16 = arith.constant dense<0xFF800000> : vector<1xf32>
    %29 = vector.multi_reduction <maximumf>, %22, %cst_16 [0] : vector<8x1xf32> to vector<1xf32>
    %30 = vector.shape_cast %29 : vector<1xf32> to vector<1x1xf32>
    %31 = vector.broadcast %30 : vector<1x1xf32> to vector<8x1xf32>
    %32 = arith.subf %22, %31 : vector<8x1xf32>
    %33 = math.exp %32 : vector<8x1xf32>
    %cst_17 = arith.constant dense<0xFF800000> : vector<1xf32>
    %34 = vector.multi_reduction <maximumf>, %28, %cst_17 [0] : vector<8x1xf32> to vector<1xf32>
    %35 = vector.shape_cast %34 : vector<1xf32> to vector<1x1xf32>
    %36 = vector.broadcast %35 : vector<1x1xf32> to vector<8x1xf32>
    %37 = arith.subf %28, %36 : vector<8x1xf32>
    %38 = math.exp %37 : vector<8x1xf32>
    %cst_18 = arith.constant dense<0.000000e+00> : vector<1xf32>
    %39 = vector.multi_reduction <add>, %33, %cst_18 [0] : vector<8x1xf32> to vector<1xf32>
    %40 = vector.shape_cast %39 : vector<1xf32> to vector<1x1xf32>
    %cst_19 = arith.constant dense<0.000000e+00> : vector<1xf32>
    %41 = vector.multi_reduction <add>, %38, %cst_19 [0] : vector<8x1xf32> to vector<1xf32>
    %42 = vector.shape_cast %41 : vector<1xf32> to vector<1x1xf32>
    %43 = arith.mulf %33, %3 : vector<8x1xf32>
    %cst_20 = arith.constant dense<0.000000e+00> : vector<1xf32>
    %44 = vector.multi_reduction <add>, %43, %cst_20 [0] : vector<8x1xf32> to vector<1xf32>
    %45 = vector.shape_cast %44 : vector<1xf32> to vector<1x1xf32>
    %cst_21 = arith.constant 9.99999971E-10 : f32
    %46 = vector.broadcast %cst_21 : f32 to vector<1x1xf32>
    %47 = arith.mulf %46, %40 : vector<1x1xf32>
    %48 = arith.addf %45, %47 : vector<1x1xf32>
    %49 = vector.broadcast %48 : vector<1x1xf32> to vector<8x1xf32>
    %50 = arith.divf %43, %49 : vector<8x1xf32>
    %51 = arith.mulf %38, %3 : vector<8x1xf32>
    %52 = vector.broadcast %42 : vector<1x1xf32> to vector<8x1xf32>
    %53 = arith.divf %51, %52 : vector<8x1xf32>
    %c0_22 = arith.constant 0 : index
    %c0_23 = arith.constant 0 : index
    %c0_24 = arith.constant 0 : index
    %54 = vector.load %arg7[%c0_22, %c0_23, %c0_24] : memref<1x8x1xf32, #tpu.memory_space<vmem>>, vector<1x8x1xf32>
    %55 = vector.shape_cast %54 : vector<1x8x1xf32> to vector<8x1xf32>
    %56 = vector.shape_cast %50 : vector<8x1xf32> to vector<1x8x1xf32>
    tpu.vector_store %arg7[%c0_22, %c0_23, %c0_24], %56 {strides = array<i32>} : memref<1x8x1xf32, #tpu.memory_space<vmem>>, vector<1x8x1xf32>,
    %c0_25 = arith.constant 0 : index
    %c0_26 = arith.constant 0 : index
    %c0_27 = arith.constant 0 : index
    %57 = vector.load %arg8[%c0_25, %c0_26, %c0_27] : memref<1x8x1xf32, #tpu.memory_space<vmem>>, vector<1x8x1xf32>
    %58 = vector.shape_cast %57 : vector<1x8x1xf32> to vector<8x1xf32>
    %59 = vector.shape_cast %53 : vector<8x1xf32> to vector<1x8x1xf32>
    tpu.vector_store %arg8[%c0_25, %c0_26, %c0_27], %59 {strides = array<i32>} : memref<1x8x1xf32, #tpu.memory_space<vmem>>, vector<1x8x1xf32>,
    %60 = arith.mulf %50, %53 : vector<8x1xf32>
    %cst_28 = arith.constant dense<0.000000e+00> : vector<1xf32>
    %61 = vector.multi_reduction <add>, %60, %cst_28 [0] : vector<8x1xf32> to vector<1xf32>
    %62 = vector.shape_cast %61 : vector<1xf32> to vector<1x1xf32>
    %c0_29 = arith.constant 0 : index
    %c0_30 = arith.constant 0 : index
    %c0_31 = arith.constant 0 : index
    %63 = vector.load %arg9[%c0_29, %c0_30, %c0_31] : memref<1x1x1xf32, #tpu.memory_space<vmem>>, vector<1x1x1xf32>
    %64 = vector.shape_cast %63 : vector<1x1x1xf32> to vector<1x1xf32>
    %65 = vector.shape_cast %62 : vector<1x1xf32> to vector<1x1x1xf32>
    tpu.vector_store %arg9[%c0_29, %c0_30, %c0_31], %65 {strides = array<i32>} : memref<1x1x1xf32, #tpu.memory_space<vmem>>, vector<1x1x1xf32>,
    return
  }
  func.func @transform_0(%arg0: i32) -> (i32, i32, i32) {
    %c0_i32 = arith.constant 0 : i32
    %c0_i32_0 = arith.constant 0 : i32
    %c0_i32_1 = arith.constant 0 : i32
    return %arg0, %c0_i32, %c0_i32_0 : i32, i32, i32
  }
  func.func @transform_1(%arg0: i32) -> (i32, i32) {
    %c0_i32 = arith.constant 0 : i32
    %c0_i32_0 = arith.constant 0 : i32
    %c0_i32_1 = arith.constant 0 : i32
    return %c0_i32, %c0_i32_0 : i32, i32
  }
  func.func @transform_2(%arg0: i32) -> (i32, i32) {
    %c0_i32 = arith.constant 0 : i32
    %c0_i32_0 = arith.constant 0 : i32
    %c0_i32_1 = arith.constant 0 : i32
    return %c0_i32, %c0_i32_0 : i32, i32
  }
  func.func @transform_3(%arg0: i32) -> (i32, i32) {
    %c0_i32 = arith.constant 0 : i32
    %c0_i32_0 = arith.constant 0 : i32
    %c0_i32_1 = arith.constant 0 : i32
    return %c0_i32, %c0_i32_0 : i32, i32
  }
  func.func @transform_4(%arg0: i32) -> i32 {
    %c0_i32 = arith.constant 0 : i32
    %c0_i32_0 = arith.constant 0 : i32
    return %c0_i32 : i32
  }
  func.func @transform_5(%arg0: i32) -> (i32, i32, i32) {
    %c0_i32 = arith.constant 0 : i32
    %c0_i32_0 = arith.constant 0 : i32
    %c0_i32_1 = arith.constant 0 : i32
    return %arg0, %c0_i32, %c0_i32_0 : i32, i32, i32
  }
  func.func @transform_6(%arg0: i32) -> (i32, i32, i32) {
    %c0_i32 = arith.constant 0 : i32
    %c0_i32_0 = arith.constant 0 : i32
    %c0_i32_1 = arith.constant 0 : i32
    return %arg0, %c0_i32, %c0_i32_0 : i32, i32, i32
  }
  func.func @transform_7(%arg0: i32) -> (i32, i32, i32) {
    %c0_i32 = arith.constant 0 : i32
    %c0_i32_0 = arith.constant 0 : i32
    %c0_i32_1 = arith.constant 0 : i32
    return %arg0, %c0_i32, %c0_i32_0 : i32, i32, i32
  }
  func.func @transform_8(%arg0: i32) -> (i32, i32, i32) {
    %c0_i32 = arith.constant 0 : i32
    %c0_i32_0 = arith.constant 0 : i32
    %c0_i32_1 = arith.constant 0 : i32
    return %arg0, %c0_i32, %c0_i32_0 : i32, i32, i32
  }
}

</mosaic_0001>

<bundles_post_ra>
// kernel: tpu_custom_call.1
= control target key start
LH: loop header
LB: loop body
LE: loop exit
PB: predicated region body
PF: predicated region fallthrough
CT: control target
= control target key end

     0   :  { %14 = vsyncpa [#allocation3], 0  ;;  %s566_s0 = inlined_call_operand.vmem [shape: f32[1,8,32], index: 0, kind: input, shape index: {}]   ;;  %s567_s1 = inlined_call_operand.hbm [shape: f32[32,512], index: 1, kind: input, shape index: {}]   ;;  %s568_s2 = inlined_call_operand.vmem [shape: f32[1,512], index: 2, kind: input, shape index: {}]   ;;  %s569_s3 = inlined_call_operand.hbm [shape: f32[1,512], index: 3, kind: input, shape index: {}]   ;;  %s570_s4 = inlined_call_operand.vmem [shape: f32[2], index: 4, kind: input, shape index: {}]   ;;  %s571_s5 = inlined_call_operand.vmem [shape: f32[1,8,1], index: 5, kind: input, shape index: {}]   ;;  %s572_s6 = inlined_call_operand.vmem [shape: f32[1,8,1], index: 6, kind: output, shape index: {0}]   ;;  %s573_s7 = inlined_call_operand.vmem [shape: f32[1,8,1], index: 7, kind: output, shape index: {1}]   ;;  %s574_s8 = inlined_call_operand.hbm [shape: f32[1,1,1], index: 8, kind: output, shape index: {2}]  }
   0x1   :  { %15 = vsyncpa [#allocation7], 0 }
   0x2   :  { %16 = vsyncpa [#allocation5], 0 }
   0x3   :  { %17 = vsyncpa [#allocation4], 0  ;;  %s483_s27 = smov [#allocation2]  }
   0x4   :  { %s25_s28 = sshll.u32 %s483_s27, 4  ;;  %s26_s28 = int_to_ptr.vmem [resolvable:$true] %s25_s28 }
   0x5   :  { %s411_s29 = scalar_lea.vmem %s26_s28, 2048  ;;  %p416_p1 = scmp.lt.s32.totalorder %s26_s28, %s26_s28 }
   0x6   :  { %p412_p0 = scmp.ne.s32.totalorder %s26_s28, %s411_s29  ;;  %p417_p2 = scmp.lt.s32.totalorder %s411_s29, %s411_s29 }
   0x8   :  { %p418_p3 = por %p417_p2, %p416_p1 }
   0xa   :  { %p419_p4 = pnand %p418_p3, %p412_p0 }
   0xc   :  { %422 = shalt.err (!%p419_p4)
}
   0xd   :  { %s484_s30 = smov 512   ;;  %s485_s9 = smov 32  }
   0xe   :  { %31 = dma.hbm_to_vmem [thread:$0]  %s567_s1, 2048, %s26_s28, [#allocation3], %s484_s30, %s484_s30, %s485_s9  }
   0xf   :  { %s486_s12 = smov [#allocation6]   ;;  %s50_s16 = sshll.u32 %s570_s4, 4  ;;  %s51_s16 = int_to_ptr.vmem [resolvable:$true] %s50_s16 }
  0x10   :  { %s40_s13 = sshll.u32 %s486_s12, 4  ;;  %s41_s13 = int_to_ptr.vmem [resolvable:$true] %s40_s13 }
  0x11   :  { %s431_s17 = scalar_lea.vmem %s41_s13, 64  ;;  %p436_p6 = scmp.lt.s32.totalorder %s41_s13, %s41_s13 }
  0x12   :  { %p432_p5 = scmp.ne.s32.totalorder %s41_s13, %s431_s17  ;;  %p437_p7 = scmp.lt.s32.totalorder %s431_s17, %s431_s17 }
  0x14   :  { %p438_p8 = por %p437_p7, %p436_p6 }
  0x16   :  { %p439_p9 = pnand %p438_p8, %p432_p5 }
  0x18   :  { %442 = shalt.err (!%p439_p9)
}
  0x19   :  { %43 = dma.hbm_to_vmem [thread:$0]  %s569_s3, 64, %s41_s13, [#allocation7]  }
  0x1a   :  { %s443_s1 = scalar_lea.vmem %s51_s16, 16  ;;  %p448_p11 = scmp.lt.s32.totalorder %s51_s16, %s51_s16 }
  0x1b   :  { %p444_p10 = scmp.ne.s32.totalorder %s51_s16, %s443_s1  ;;  %p449_p12 = scmp.lt.s32.totalorder %s443_s1, %s443_s1 }
  0x1d   :  { %p450_p13 = por %p449_p12, %p448_p11 }
  0x1f   :  { %p451_p0 = pnand %p450_p13, %p444_p10 }
  0x21   :  { %454 = shalt.err (!%p451_p0)
}
  0x22   :  { %s487_s4 = smov [#allocation8]  }
  0x23   :  { %53 = dma.vmem_to_smem %s51_s16, 16, %s487_s4, [#allocation5]  }
  0x24   :  { %475 = dma.done.wait [#allocation3], 2048  }
  0x25   :  { %476 = vsyncadd [#allocation3], 4294965248 }
  0x26   :  { %477 = dma.done.wait [#allocation7], 64  }
  0x27   :  { %478 = vsyncadd [#allocation7], 4294967232 }
  0x28   :  { %479 = dma.done.wait [#allocation5], 16  }
  0x29   :  { %480 = vsyncadd [#allocation5], 4294967280 }
  0x2a   :  { %65 = sfence }
  0x2b   :  { %v81_v0 = vld [vmem:[#allocation2 + $0x68] sm:$0xff]  ;;  %v80_v1 = vld [vmem:[#allocation2 + $0x60] sm:$0xff]  ;;  %v83_v2 = vld [vmem:[#allocation2 + $0x78] sm:$0xff]  ;;  %vm106_vm0 = vcmask 261120   ;;  %v488_v17 = vmov 0.0   ;;  %v86_v18 = vlaneseq  ;;  %vm333_vm5 = vcmask 7168  }
  0x2c   :  { %134 = vmatprep.subr.mxu0 %v81_v0  ;;  %205 = vmatprep.subr.mxu1 %v83_v2  ;;  %v77_v3 = vld [vmem:[#allocation2 + $0x48] sm:$0xff]  ;;  %v82_v4 = vld [vmem:[#allocation2 + $0x70] sm:$0xff]  ;;  %v76_v5 = vld [vmem:[#allocation2 + $0x40] sm:$0xff]  ;;  %s489_s28 = smov [#allocation9]   ;;  %vm358_vm6 = vcmask 0  }
  0x2d   :  { %135 = vmatpush1.msra.mxu0 %v80_v1  ;;  %206 = vmatpush1.msra.mxu1 %v82_v4  ;;  %v79_v6 = vld [vmem:[#allocation2 + $0x58] sm:$0xff]  ;;  %v73_v7 = vld [vmem:[#allocation2 + $0x28] sm:$0xff]  ;;  %v78_v8 = vld [vmem:[#allocation2 + $0x50] sm:$0xff]  ;;  %v87_v19 = vshrl.u32 %v86_v18, 7  ;;  %s370_s29 = sshll.u32 %s489_s28, 4  ;;  %s371_s29 = int_to_ptr.vmem [resolvable:$true] %s370_s29 }
  0x2e   :  { %136 = vmatprep.subr.mxu0 %v77_v3  ;;  %207 = vmatprep.subr.mxu1 %v79_v6  ;;  %v72_v9 = vld [vmem:[#allocation2 + $0x20] sm:$0xff]  ;;  %v75_v10 = vld [vmem:[#allocation2 + $0x38] sm:$0xff]  ;;  %v69_v11 = vld [vmem:[#allocation2 + $0x8] sm:$0xff]  ;;  %s459_s30 = scalar_lea.vmem %s371_s29, 32  ;;  %p460_p2 = scmp.lt.s32.totalorder %s371_s29, %s371_s29 }
  0x2f   :  { %137 = vmatpush1.msra.mxu0 %v76_v5  ;;  %208 = vmatpush1.msra.mxu1 %v78_v8  ;;  %v74_v12 = vld [vmem:[#allocation2 + $0x30] sm:$0xff]  ;;  %v68_v13 = vld [vmem:[#allocation2] sm:$0xff]  ;;  %v71_v14 = vld [vmem:[#allocation2 + $0x18] sm:$0xff]  ;;  %v88_v20 = vsub.s32 0, %v87_v19  ;;  %v96_v22 = vsub.s32 2, %v87_v19  ;;  %v92_v23 = vsub.s32 1, %v87_v19 }
  0x30   :  { %138 = vmatprep.subr.mxu0 %v73_v7  ;;  %209 = vmatprep.subr.mxu1 %v75_v10  ;;  %v66_v15 = vld [vmem:[%s566_s0] sm:$0xff]  ;;  %v70_v16 = vld [vmem:[#allocation2 + $0x10] sm:$0xff]  ;;  %v100_v25 = vsub.s32 3, %v87_v19  ;;  %s293_s0 = sld [smem:[#allocation8]] }
  0x31   :  { %139 = vmatpush1.msra.mxu0 %v72_v9  ;;  %210 = vmatpush1.msra.mxu1 %v74_v12  ;;  %v84_v21 = vld [vmem:[%s568_s2] sm:$0xf]  ;;  %s387_s2 = sld [smem:[#allocation8 + $0x1]] }
  0x32   :  { %140 = vmatprep.subr.mxu0 %v69_v11  ;;  %174 = vmatprep.mubr.f32.mxu0 %v488_v17  ;;  %v89_v24 = vrot.slane %v84_v21, %v88_v20  ;;  %v97_v26 = vrot.slane %v84_v21, %v96_v22  ;;  %v93_v27 = vrot.slane %v84_v21, %v92_v23  ;;  %v264_v30 = vld [vmem:[#allocation6] sm:$0xf] }
  0x33   :  { %141 = vmatpush1.msra.mxu0 %v68_v13  ;;  %211 = vmatprep.subr.mxu1 %v71_v14  ;;  %v101_v33 = vrot.slane %v84_v21, %v100_v25  ;;  %v269_v38 = vrot.slane %v264_v30, %v88_v20  ;;  %v273_v39 = vrot.slane %v264_v30, %v92_v23  ;;  %v67_v14 = vld [vmem:[%s571_s5] sm:$0xff] }
  0x34   :  { %385 = vmatmul.mubr.msk.f32.vlgmr.msra.gmra.mxu0 %vm106_vm0, %v66_v15  ;;  %212 = vmatpush1.msra.mxu1 %v70_v16  ;;  %v277_v44 = vrot.slane %v264_v30, %v96_v22  ;;  %v281_v47 = vrot.slane %v264_v30, %v100_v25 }
  0x35   :  { %245 = vmatprep.mubr.f32.mxu1 %v488_v17 }
  0x36   :  { %386 = vmatmul.mubr.msk.f32.vlgmr.msra.gmra.mxu1 %vm106_vm0, %v66_v15  ;;  %v294_v56 = vstv %s293_s0 }
  0x37   :  { %v300_v59 = vstv %s387_s2 }
  0xf4   :  { %v176_v28 = vpop.f32.mrf.mxu0 }
  0xf5   :  { %v177_v29 = vadd.f32 %v176_v28, %v89_v24 }
  0xf6   :  { %v247_v31 = vpop.f32.mrf.mxu1  ;;  %v178_v32 = vpop.f32.mrf.mxu0 }
  0xf7   :  { %vm252_vm1 = vcmp.gt.f32.partialorder %v177_v29, 0.0  ;;  %v256_v34 = vmul.f32 0.01, %v177_v29  ;;  %v248_v35 = vadd.f32 %v247_v31, %v97_v26  ;;  %v179_v36 = vadd.f32 %v178_v32, %v93_v27 }
  0xf8   :  { %v249_v37 = vpop.f32.mrf.mxu1 }
  0xf9   :  { %vm254_vm2 = vcmp.gt.f32.partialorder %v248_v35, 0.0  ;;  %v258_v40 = vmul.f32 0.01, %v248_v35  ;;  %vm253_vm3 = vcmp.gt.f32.partialorder %v179_v36, 0.0  ;;  %v257_v41 = vmul.f32 0.01, %v179_v36 }
  0xfa   :  { %v250_v42 = vadd.f32 %v249_v37, %v101_v33  ;;  %v260_v43 = vsel %vm252_vm1, %v177_v29, %v256_v34 }
  0xfb   :  { %v261_v45 = vsel %vm253_vm3, %v179_v36, %v257_v41  ;;  %v262_v46 = vsel %vm254_vm2, %v248_v35, %v258_v40  ;;  %v286_v49 = vmul.f32 %v269_v38, %v260_v43 }
  0xfc   :  { %vm255_vm4 = vcmp.gt.f32.partialorder %v250_v42, 0.0  ;;  %v259_v48 = vmul.f32 0.01, %v250_v42  ;;  %v287_v50 = vmul.f32 %v273_v39, %v261_v45  ;;  %v288_v53 = vmul.f32 %v277_v44, %v262_v46 }
  0xfe   :  { %v290_v51 = vadd.f32 %v287_v50, %v286_v49  ;;  %v263_v52 = vsel %vm255_vm4, %v250_v42, %v259_v48 }
  0xff   :  { %v289_v54 = vmul.f32 %v281_v47, %v263_v52 }
 0x100   :  { %291 = vadd.xlane.f32.xlu0 %v290_v51 }
 0x101   :  { %v296_v55 = vadd.f32 %v289_v54, %v288_v53 }
 0x104   :  { %297 = vadd.xlane.f32.xlu0 %v296_v55 }
 0x189   :  { %v292_v57 = vpop.xlane.xlu0 %291 }
 0x18a   :  { %v295_v58 = vadd.f32 %v294_v56, %v292_v57 }
 0x18c   :  { %v302_v60 = vrot.slane %v295_v58, 4 }
 0x18d   :  { %v298_v61 = vpop.xlane.xlu0 %297 }
 0x18e   :  { %v303_v62 = vmax.f32 %v295_v58, %v302_v60  ;;  %v301_v63 = vadd.f32 %v300_v59, %v298_v61 }
 0x190   :  { %v304_v0 = vrot.slane %v303_v62, 2  ;;  %v311_v1 = vrot.slane %v301_v63, 4 }
 0x192   :  { %v305_v2 = vmax.f32 %v303_v62, %v304_v0  ;;  %v312_v3 = vmax.f32 %v301_v63, %v311_v1 }
 0x194   :  { %v306_v4 = vrot.slane %v305_v2, 1  ;;  %v313_v5 = vrot.slane %v312_v3, 2 }
 0x196   :  { %v307_v6 = vmax.f32 %v305_v2, %v306_v4  ;;  %v314_v7 = vmax.f32 %v312_v3, %v313_v5 }
 0x198   :  { %v308_v8 = vsub.f32 %v295_v58, %v307_v6  ;;  %v315_v9 = vrot.slane %v314_v7, 1 }
 0x19a   :  { %v309_v10 = vmul.f32 1.442695, %v308_v8  ;;  %v316_v11 = vmax.f32 %v314_v7, %v315_v9 }
 0x19c   :  { %395 = vpow2.f32 %v309_v10  ;;  %v317_v12 = vsub.f32 %v301_v63, %v316_v11 }
 0x19e   :  { %v318_v13 = vmul.f32 1.442695, %v317_v12 }
 0x1a0   :  { %397 = vpow2.f32 %v318_v13 }
 0x1a9   :  { %v396_v15 = vpop.eup %395 }
 0x1aa   :  { %v320_v16 = vrot.slane %v396_v15, 4  ;;  %v332_v17 = vmul.f32 %v396_v15, %v67_v14 }
 0x1ac   :  { %v321_v18 = vadd.f32 %v396_v15, %v320_v16  ;;  %v334_v19 = vsel %vm333_vm5, %v332_v17, 0.0 }
 0x1ad   :  { %v398_v20 = vpop.eup %397  ;;  %v335_v21 = vrot.slane %v334_v19, 4 }
 0x1ae   :  { %v322_v22 = vrot.slane %v321_v18, 2  ;;  %v326_v23 = vrot.slane %v398_v20, 4  ;;  %v345_v39 = vmul.f32 %v398_v20, %v67_v14 }
 0x1af   :  { %v336_v24 = vadd.f32 %v335_v21, %v334_v19 }
 0x1b0   :  { %v323_v25 = vadd.f32 %v322_v22, %v321_v18  ;;  %v327_v26 = vadd.f32 %v398_v20, %v326_v23 }
 0x1b1   :  { %v337_v27 = vrot.slane %v336_v24, 2 }
 0x1b2   :  { %v324_v28 = vrot.slane %v323_v25, 1  ;;  %v328_v29 = vrot.slane %v327_v26, 2 }
 0x1b3   :  { %v338_v30 = vadd.f32 %v337_v27, %v336_v24 }
 0x1b4   :  { %v325_v31 = vadd.f32 %v324_v28, %v323_v25  ;;  %v329_v32 = vadd.f32 %v328_v29, %v327_v26 }
 0x1b5   :  { %v339_v33 = vrot.slane %v338_v30, 1 }
 0x1b6   :  { %v330_v34 = vrot.slane %v329_v32, 1  ;;  %v341_v35 = vmul.f32 1e-09, %v325_v31 }
 0x1b7   :  { %v340_v36 = vadd.f32 %v339_v33, %v338_v30 }
 0x1b8   :  { %v331_v37 = vadd.f32 %v330_v34, %v329_v32 }
 0x1b9   :  { %v342_v38 = vadd.f32 %v341_v35, %v340_v36 }
 0x1ba   :  { %399 = vrcp.f32 %v331_v37 }
 0x1bb   :  { %401 = vrcp.f32 %v342_v38 }
 0x1c7   :  { %v400_v40 = vpop.eup %399 }
 0x1c8   :  { %v402_v41 = vpop.eup %401  ;;  %v347_v42 = vmul.f32 %v400_v40, %v345_v39 }
 0x1c9   :  { %v344_v43 = vmul.f32 %v402_v41, %v332_v17 }
 0x1ca   :  { %349 = vst.msk [vmem:[%s573_s7] sm:$0xff] %vm333_vm5, %v347_v42  ;;  %s455_s7 = scalar_lea.vmem %s371_s29, 16 }
 0x1cb   :  { %348 = vst.msk [vmem:[%s572_s6] sm:$0xff] %vm333_vm5, %v344_v43  ;;  %v350_v44 = vmul.f32 %v347_v42, %v344_v43  ;;  %p456_p1 = scmp.ne.s32.totalorder %s371_s29, %s455_s7  ;;  %p461_p3 = scmp.lt.s32.totalorder %s459_s30, %s455_s7 }
 0x1cd   :  { %v351_v45 = vsel %vm333_vm5, %v350_v44, 0.0  ;;  %p462_p4 = por %p461_p3, %p460_p2 }
 0x1ce   :  { %v352_v46 = vrot.slane %v351_v45, 4 }
 0x1cf   :  { %p463_p5 = pnand %p462_p4, %p456_p1 }
 0x1d0   :  { %v353_v47 = vadd.f32 %v352_v46, %v351_v45 }
 0x1d2   :  { %v354_v48 = vrot.slane %v353_v47, 2 }
 0x1d4   :  { %v355_v49 = vadd.f32 %v354_v48, %v353_v47 }
 0x1d6   :  { %v356_v50 = vrot.slane %v355_v49, 1 }
 0x1d8   :  { %v357_v51 = vadd.f32 %v356_v50, %v355_v49 }
 0x1da   :  { %359 = vst.msk [vmem:[#allocation9] sm:$0x1] %vm358_vm6, %v357_v51 }
 0x1db   :  { %466 = shalt.err (!%p463_p5)
}
 0x1dc   :  { %373 = dma.vmem_to_hbm [thread:$0]  %s371_s29, 16, %s574_s8, [#allocation4]  }
 0x1dd   :  { %481 = dma.done.wait [#allocation4], 16  }
 0x1de   :  { %482 = vsyncadd [#allocation4], 4294967280 }
 0x1df   :  { %381 = vsyncpa [#allocation3], 1 }
 0x1e0   :  { %382 = vsyncpa [#allocation7], 1 }
 0x1e1   :  { %383 = vsyncpa [#allocation4], 1 }
 0x1e2   :  { %384 = vsyncpa [#allocation5], 1 }

</bundles_post_ra>
